<compile_context>
chip_gen: v7x
topology: tpu7x:2x2x1
jax: 0.10.0
libtpu: 0.0.40
codegen_flags: <defaults>
</compile_context>

<pallas_src>
import jax
import jax.numpy as jnp
from jax.experimental import pallas as pl
from jax.experimental.pallas import tpu as pltpu


def _decoder_kernel(x_ref, w_ref, o_ref):
    """x_ref: (1, C_in, T) VMEM block (lane axis = L tile)
       w_ref: (C_in, C_out*K) SMEM weight scalars, column j = co*K + k
       o_ref: (1, C_out*K, T) VMEM block, row j = co*K + k."""
    c_in = x_ref.shape[1]
    n_taps = o_ref.shape[1]                 # C_out * K (== 2 for the default config)
    x = x_ref[0]                            # (C_in, T) f32 -- one load of the tile
    for j in range(n_taps):                 # fully unrolled
        acc = x[0:1, :] * w_ref[0, j]       # VPU broadcast-mul, weight from SMEM sreg
        for ci in range(1, c_in):           # unrolled VPU FMAs
            acc = acc + x[ci:ci + 1, :] * w_ref[ci, j]
        o_ref[0, j:j + 1, :] = jnp.maximum(acc, 0.0).astype(o_ref.dtype)  # ReLU


_TILE_CANDIDATES = (2048, 1024, 512, 256, 128)


def _pick_tile(L):
    """Return (tile_l, padded_l): lane-dense tiles, pad only when unavoidable."""
    if L <= 2048:
        return L, L                          # single full-extent block (always legal)
    for t in _TILE_CANDIDATES:
        if L % t == 0:
            return t, L
    pad_to = 512
    Lp = ((L + pad_to - 1) // pad_to) * pad_to
    return pad_to, Lp                        # zero-pad tail; sliced off after the call


def decoder_forward(x_ncl, weight):
    """x_ncl: (N, C_in, L) f32, weight: (C_in, C_out, K) f32 (nn.ConvTranspose1d layout).
       Returns relu(conv_transpose1d(x, stride=K)): (N, C_out, K*L) f32."""
    N, C_in, L = x_ncl.shape
    c_in_w, C_out, K = weight.shape
    assert C_in == c_in_w

    tile_l, Lp = _pick_tile(L)
    x_in = x_ncl if Lp == L else jnp.pad(x_ncl, ((0, 0), (0, 0), (0, Lp - L)))
    n_l_tiles = Lp // tile_l

    # 6 weight scalars, SMEM-resident: column j = co*K + k
    w_smem = weight.reshape(C_in, C_out * K)

    out = pl.pallas_call(
        _decoder_kernel,
        out_shape=jax.ShapeDtypeStruct((N, C_out * K, Lp), jnp.float32),
        grid=(N, n_l_tiles),
        in_specs=[
            pl.BlockSpec((1, C_in, tile_l), lambda n, l: (n, 0, l)),
            pl.BlockSpec(memory_space=pltpu.MemorySpace.SMEM),
        ],
        out_specs=pl.BlockSpec((1, C_out * K, tile_l), lambda n, l: (n, 0, l)),
        compiler_params=pltpu.CompilerParams(
            dimension_semantics=("parallel", "parallel")),
    )(x_in, w_smem)

    # Interleave the K taps along L: result[n, co, K*t + k] = out[n, co*K + k, t]
    # TODO(synk): this final small transpose could be folded into the consumer instead.
    out = out.reshape(N, C_out, K, Lp)
    out = jnp.swapaxes(out, 2, 3).reshape(N, C_out, K * Lp)
    if Lp != L:
        out = out[:, :, : K * L]
    return out


def decoder_reference(x_ncl, weight):
    """Pure-JAX reference of relu(conv_transpose1d(kernel=2, stride=2, no bias))."""
    N, C_in, L = x_ncl.shape
    _, C_out, K = weight.shape
    y = jnp.einsum("nct,cok->notk", x_ncl, weight)   # (N, C_out, L, K)
    y = y.reshape(N, C_out, L * K)
    return jnp.maximum(y, 0.0)


if __name__ == "__main__":
    in_features, out_features, kernel_size = 3, 1, 2

    key = jax.random.PRNGKey(0)
    kx, kw, kx2 = jax.random.split(key, 3)

    # small shapes consistent with the module
    N, L = 2, 16
    x = jax.random.normal(kx, (N, in_features, L), dtype=jnp.float32)
    w = jax.random.normal(kw, (in_features, out_features, kernel_size),
                          dtype=jnp.float32) * 0.1

    out = jax.block_until_ready(decoder_forward(x, w))
    ref = decoder_reference(x, w)
    assert out.shape == (N, out_features, kernel_size * L), out.shape
    assert jnp.allclose(out, ref, atol=1e-5, rtol=1e-5), "mismatch vs reference (small)"

    # also exercise the lane-dense L-tiled path (TILE_L=512, 5 tiles per batch row)
    L2 = 2560
    x2 = jax.random.normal(kx2, (N, in_features, L2), dtype=jnp.float32)
    out2 = jax.block_until_ready(decoder_forward(x2, w))
    ref2 = decoder_reference(x2, w)
    assert out2.shape == (N, out_features, kernel_size * L2), out2.shape
    assert jnp.allclose(out2, ref2, atol=1e-4, rtol=1e-4), "mismatch vs reference (tiled)"

    print("KERNEL_OK")
</pallas_src>

<mosaic_0001>
module attributes {stable_mosaic.version = 11 : i64} {
  func.func @_decoder_kernel(%arg0: i32, %arg1: i32, %arg2: memref<1x3x16xf32, #tpu.memory_space<vmem>>, %arg3: memref<3x2xf32, #tpu.memory_space<smem>>, %arg4: memref<1x2x16xf32, #tpu.memory_space<vmem>>) attributes {dimension_semantics = [#tpu.dimension_semantics<parallel>, #tpu.dimension_semantics<parallel>], iteration_bounds = array<i64: 2, 1>, scalar_prefetch = 0 : i64, scratch_operands = 0 : i64, tpu.core_type = #tpu.core_type<tc>, window_params = [{transform_indices = @transform_0, window_bounds = array<i64: 1, 3, 16>}, {transform_indices = @transform_1, window_bounds = array<i64: 3, 2>}, {transform_indices = @transform_2, window_bounds = array<i64: 1, 2, 16>}]} {
    %c0 = arith.constant 0 : index
    %c0_0 = arith.constant 0 : index
    %c0_1 = arith.constant 0 : index
    %0 = vector.load %arg2[%c0, %c0_0, %c0_1] : memref<1x3x16xf32, #tpu.memory_space<vmem>>, vector<1x3x16xf32>
    %1 = vector.shape_cast %0 : vector<1x3x16xf32> to vector<3x16xf32>
    %2 = vector.extract_strided_slice %1 {offsets = [0, 0], sizes = [1, 16], strides = [1, 1]} : vector<3x16xf32> to vector<1x16xf32>
    %c0_2 = arith.constant 0 : index
    %c0_3 = arith.constant 0 : index
    %3 = memref.load %arg3[%c0_2, %c0_3] : memref<3x2xf32, #tpu.memory_space<smem>>
    %4 = vector.broadcast %3 : f32 to vector<1x16xf32>
    %5 = arith.mulf %2, %4 : vector<1x16xf32>
    %6 = vector.extract_strided_slice %1 {offsets = [1, 0], sizes = [1, 16], strides = [1, 1]} : vector<3x16xf32> to vector<1x16xf32>
    %c1 = arith.constant 1 : index
    %c0_4 = arith.constant 0 : index
    %7 = memref.load %arg3[%c1, %c0_4] : memref<3x2xf32, #tpu.memory_space<smem>>
    %8 = vector.broadcast %7 : f32 to vector<1x16xf32>
    %9 = arith.mulf %6, %8 : vector<1x16xf32>
    %10 = arith.addf %5, %9 : vector<1x16xf32>
    %11 = vector.extract_strided_slice %1 {offsets = [2, 0], sizes = [1, 16], strides = [1, 1]} : vector<3x16xf32> to vector<1x16xf32>
    %c2 = arith.constant 2 : index
    %c0_5 = arith.constant 0 : index
    %12 = memref.load %arg3[%c2, %c0_5] : memref<3x2xf32, #tpu.memory_space<smem>>
    %13 = vector.broadcast %12 : f32 to vector<1x16xf32>
    %14 = arith.mulf %11, %13 : vector<1x16xf32>
    %15 = arith.addf %10, %14 : vector<1x16xf32>
    %cst = arith.constant 0.000000e+00 : f32
    %16 = vector.broadcast %cst : f32 to vector<1x16xf32>
    %17 = arith.maximumf %15, %16 : vector<1x16xf32>
    %c0_6 = arith.constant 0 : index
    %c0_7 = arith.constant 0 : index
    %c0_8 = arith.constant 0 : index
    %18 = vector.load %arg4[%c0_6, %c0_7, %c0_8] : memref<1x2x16xf32, #tpu.memory_space<vmem>>, vector<1x1x16xf32>
    %19 = vector.shape_cast %18 : vector<1x1x16xf32> to vector<1x16xf32>
    %20 = vector.shape_cast %17 : vector<1x16xf32> to vector<1x1x16xf32>
    tpu.vector_store %arg4[%c0_6, %c0_7, %c0_8], %20 {strides = array<i32>} : memref<1x2x16xf32, #tpu.memory_space<vmem>>, vector<1x1x16xf32>,
    %21 = vector.extract_strided_slice %1 {offsets = [0, 0], sizes = [1, 16], strides = [1, 1]} : vector<3x16xf32> to vector<1x16xf32>
    %c0_9 = arith.constant 0 : index
    %c1_10 = arith.constant 1 : index
    %22 = memref.load %arg3[%c0_9, %c1_10] : memref<3x2xf32, #tpu.memory_space<smem>>
    %23 = vector.broadcast %22 : f32 to vector<1x16xf32>
    %24 = arith.mulf %21, %23 : vector<1x16xf32>
    %25 = vector.extract_strided_slice %1 {offsets = [1, 0], sizes = [1, 16], strides = [1, 1]} : vector<3x16xf32> to vector<1x16xf32>
    %c1_11 = arith.constant 1 : index
    %c1_12 = arith.constant 1 : index
    %26 = memref.load %arg3[%c1_11, %c1_12] : memref<3x2xf32, #tpu.memory_space<smem>>
    %27 = vector.broadcast %26 : f32 to vector<1x16xf32>
    %28 = arith.mulf %25, %27 : vector<1x16xf32>
    %29 = arith.addf %24, %28 : vector<1x16xf32>
    %30 = vector.extract_strided_slice %1 {offsets = [2, 0], sizes = [1, 16], strides = [1, 1]} : vector<3x16xf32> to vector<1x16xf32>
    %c2_13 = arith.constant 2 : index
    %c1_14 = arith.constant 1 : index
    %31 = memref.load %arg3[%c2_13, %c1_14] : memref<3x2xf32, #tpu.memory_space<smem>>
    %32 = vector.broadcast %31 : f32 to vector<1x16xf32>
    %33 = arith.mulf %30, %32 : vector<1x16xf32>
    %34 = arith.addf %29, %33 : vector<1x16xf32>
    %cst_15 = arith.constant 0.000000e+00 : f32
    %35 = vector.broadcast %cst_15 : f32 to vector<1x16xf32>
    %36 = arith.maximumf %34, %35 : vector<1x16xf32>
    %c0_16 = arith.constant 0 : index
    %c1_17 = arith.constant 1 : index
    %c0_18 = arith.constant 0 : index
    %37 = vector.load %arg4[%c0_16, %c1_17, %c0_18] : memref<1x2x16xf32, #tpu.memory_space<vmem>>, vector<1x1x16xf32>
    %38 = vector.shape_cast %37 : vector<1x1x16xf32> to vector<1x16xf32>
    %39 = vector.shape_cast %36 : vector<1x16xf32> to vector<1x1x16xf32>
    tpu.vector_store %arg4[%c0_16, %c1_17, %c0_18], %39 {strides = array<i32>} : memref<1x2x16xf32, #tpu.memory_space<vmem>>, vector<1x1x16xf32>,
    return
  }
  func.func @transform_0(%arg0: i32, %arg1: i32) -> (i32, i32, i32) {
    %c0_i32 = arith.constant 0 : i32
    %c0_i32_0 = arith.constant 0 : i32
    return %arg0, %c0_i32, %arg1 : i32, i32, i32
  }
  func.func @transform_1(%arg0: i32, %arg1: i32) -> (i32, i32) {
    %c0_i32 = arith.constant 0 : i32
    %c0_i32_0 = arith.constant 0 : i32
    %c0_i32_1 = arith.constant 0 : i32
    return %c0_i32, %c0_i32_0 : i32, i32
  }
  func.func @transform_2(%arg0: i32, %arg1: i32) -> (i32, i32, i32) {
    %c0_i32 = arith.constant 0 : i32
    %c0_i32_0 = arith.constant 0 : i32
    return %arg0, %c0_i32, %arg1 : i32, i32, i32
  }
}

</mosaic_0001>

<bundles_post_ra>
// kernel: tpu_custom_call.1
= control target key start
LH: loop header
LB: loop body
LE: loop exit
PB: predicated region body
PF: predicated region fallthrough
CT: control target
= control target key end

     0   :  { %7 = vsyncpa [#allocation4], 0  ;;  %s649_s0 = inlined_call_operand.vmem [shape: f32[2,3,16], index: 0, kind: input, shape index: {}]   ;;  %s650_s1 = inlined_call_operand.vmem [shape: f32[3,2], index: 1, kind: input, shape index: {}]   ;;  %s651_s2 = inlined_call_operand.hbm [shape: f32[2,2,16], index: 2, kind: output, shape index: {}]  }
   0x1   :  { %8 = vsyncpa [#allocation3], 0 }
   0x2   :  { %10 = vsyncpa [#allocation3 + $0x1], 0  ;;  %s516_s9 = smov 0   ;;  %s518_s10 = smov 0  }
   0x3   :  { %s520_s11 = smov 0   ;;  %s522_s12 = smov 0  }
   0x4   :  { %s524_s13 = smov 0   ;;  %s526_s14 = smov 0  }
   0x5 LB: > { %s316_s15 = sadd.s32 4294967295, %s497_s14   ;;  %s317_s16 = sadd.s32 4294967294, %s497_s14   ;;  %s497_s14 = sphi %s526_s14, %s16_s14   ;;  %s493_s13 = sphi %s524_s13, %s660_s13   ;;  %s489_s12 = sphi %s522_s12, %s659_s12   ;;  %s485_s11 = sphi %s520_s11, %s658_s11   ;;  %s481_s10 = sphi %s518_s10, %s657_s10   ;;  %s477_s9 = sphi %s516_s9, %s656_s9  }
   0x6   : > { %s28_s17 = sadd.s32 1, %s493_s13  ;;  %s86_s18 = sadd.s32 1, %s485_s11 }
   0x7   : > { %p30_p0 = scmp.ge.s32.totalorder %s28_s17, 2  ;;  %p96_p1 = scmp.ne.s32.totalorder %s485_s11, %s481_s10 }
   0x8   : > { %p97_p2 = scmp.eq.s32.totalorder %s316_s15, 1  ;;  %p102_p3 = scmp.ne.s32.totalorder %s481_s10, %s477_s9 }
   0x9   : > { %s662_s17 = smov (%p30_p0, %s28_s17), 0  ;;  %p103_p5 = scmp.eq.s32.totalorder %s317_s16, 1 }
   0xa   : > { %p556_p4 = por %p97_p2, %p96_p1  ;;  %s81_s20 = ssub.s32 %s493_s13, %s662_s17 }
   0xb   : > { %p318_p6 = scmp.ge.s32.totalorder %s497_s14, 1  ;;  %p84_p7 = scmp.eq.s32.totalorder %s81_s20, 0 }
   0xc   : > { %p563_p8 = por %p103_p5, %p102_p3  ;;  %p110_p9 = scmp.lt.s32.totalorder %s497_s14, 3 }
   0xd   : > { %s569_s22 = scalar_select %p84_p7, %s485_s11, %s86_s18  }
   0xe   : > { %p571_p10 = pnand %p318_p6, %p110_p9  ;;  %p575_p11 = scmp.eq.s32.totalorder %s316_s15, 0 }
   0xf   : > { %s123_s27 = sshll.u32 %s650_s1, 4  ;;  %s124_s27 = int_to_ptr.vmem [resolvable:$true] %s123_s27 }
  0x10   : > { %p340_p12 = pneg %p571_p10  ;;  %s400_s28 = scalar_lea.vmem %s124_s27, 64 }
  0x11   : > { %p401_p0 = scmp.ne.s32.totalorder %s124_s27, %s400_s28  ;;  %p408_p5 = scmp.lt.s32.totalorder %s124_s27, %s124_s27 }
  0x12   : > { %p341_p13 = pnand %p575_p11, %p340_p12  ;;  %p409_p6 = scmp.lt.s32.totalorder %s400_s28, %s400_s28 }
  0x14   : > { %p402_p1 = pneg %p341_p13  ;;  %p410_p7 = por %p409_p6, %p408_p5 }
  0x16   : > { %p403_p2 = pnand %p402_p1, %p401_p0 }
  0x18   : > { %p404_p3 = pneg %p403_p2 }
  0x1a   : > { %p411_p9 = pnand %p410_p7, %p404_p3 }
  0x1c   : > { %414 = shalt.err (!%p411_p9)
}
  0x1d   : > { %s499_s29 = smov [#allocation2]   ;;  %146 = sbr.rel (%p571_p10) target bundleno = 73 (0x49), region = 28 }
  0x1e   : > { %343 = dma.vmem_to_smem (!%p341_p13), %s124_s27, 64, %s499_s29, [#allocation4]  }
  0x24   : > { %468 = dma.done.wait (%p575_p11), [#allocation4], 64  }
  0x25   : > { %470 = vsyncadd (%p575_p11), [#allocation4], 4294967232 }
  0x26   : > { %152 = sfence }
  0x27   : > { %p171_p12 = scmp.lt.s32.totalorder %s489_s12, 1  ;;  %s179_s30 = sld [smem:[#allocation2]]  ;;  %vm197_vm0 = vcmask 122880  }
  0x28   : > { %s325_s3 = sld [smem:[#allocation2 + $0x80]]  ;;  %s327_s16 = sld [smem:[#allocation2 + $0x1]] }
  0x29   : > { %s172_s4 = scalar_select %p171_p12, %s489_s12, 1 }
  0x2a   : > { %s326_s5 = sld [smem:[#allocation2 + $0x100]]  ;;  %s328_s18 = sld [smem:[#allocation2 + $0x81]] }
  0x2b   : > { %s324_s6 = sshll.u32 %s172_s4, 2  ;;  %s329_s20 = sld [smem:[#allocation2 + $0x101]] }
  0x2c   : > { %s177_s15 = scalar_lea.vmem %s649_s0, %s324_s6  ;;  %s168_s23 = sand.u32 1, %s481_s10  }
  0x2d   : > { %v178_v0 = vld [vmem:[%s177_s15] sm:$0x7]  ;;  %v180_v1 = vstv %s179_s30  ;;  %s323_s24 = sshll.u32 %s168_s23, 1  ;;  %s331_s27 = sshll.u32 %s489_s12, 5 }
  0x2e   : > { %v183_v2 = vstv %s325_s3  ;;  %v181_v3 = vmul.f32 %v180_v1, %v178_v0  ;;  %v200_v10 = vstv %s327_s16  ;;  %s170_s25 = scalar_lea.vmem [#allocation5], %s323_s24  ;;  %s604_s30 = scalar_lea.hbm %s651_s2, %s331_s27 }
  0x2f   : > { %v184_v4 = vmul.f32 %v183_v2, %v178_v0  ;;  %v201_v12 = vmul.f32 %v200_v10, %v178_v0  ;;  %s233_s26 = sshll.u32 %s170_s25, 4  ;;  %s219_s3 = scalar_lea.sflag [#allocation3], %s168_s23  ;;  %s599_s26 = int_to_ptr.vmem [resolvable:$true] %s233_s26 }
  0x30   : > { %v190_v5 = vstv %s326_s5  ;;  %v203_v11 = vstv %s328_s18  ;;  %s415_s4 = scalar_lea.vmem %s599_s26, 32  ;;  %s500_s12 = smov [#allocation5]  }
  0x31   : > { %v186_v6 = vrot.slane %v184_v4, 1  ;;  %v191_v7 = vmul.f32 %v190_v5, %v178_v0  ;;  %v204_v13 = vmul.f32 %v203_v11, %v178_v0  ;;  %v210_v14 = vstv %s329_s20  ;;  %p416_p10 = scmp.ne.s32.totalorder %s599_s26, %s415_s4  ;;  %s419_s5 = sshll.u32 %s500_s12, 4  ;;  %s420_s5 = int_to_ptr.vmem [resolvable:$false] %s419_s5 }
  0x32   : > { %v211_v16 = vmul.f32 %v210_v14, %v178_v0  ;;  %s421_s6 = scalar_lea.vmem %s420_s5, 64  ;;  %p422_p0 = scmp.lt.s32.totalorder %s599_s26, %s420_s5 }
  0x33   : > { %v188_v8 = vadd.f32 %v186_v6, %v181_v3  ;;  %v193_v9 = vrot.slane %v191_v7, 2  ;;  %v206_v17 = vrot.slane %v204_v13, 1  ;;  %p417_p11 = pnand %p416_p10, %p556_p4  ;;  %p423_p1 = scmp.lt.s32.totalorder %s421_s6, %s415_s4 }
  0x34   : > { %v213_v19 = vrot.slane %v211_v16, 2 }
  0x35   : > { %v195_v15 = vadd.f32 %v193_v9, %v188_v8  ;;  %v208_v20 = vadd.f32 %v206_v17, %v201_v12  ;;  %p418_p13 = pneg %p417_p11  ;;  %p424_p2 = por %p423_p1, %p422_p0 }
  0x37   : > { %v196_v18 = vmax.f32 %v195_v15, 0.0  ;;  %v215_v21 = vadd.f32 %v213_v19, %v208_v20  ;;  %p425_p3 = pnand %p424_p2, %p418_p13 }
  0x39   : > { %198 = vst.msk [vmem:[%s170_s25] sm:$0x1] %vm197_vm0, %v196_v18  ;;  %v216_v22 = vmax.f32 %v215_v21, 0.0 }
  0x3b   : > { %217 = vst.msk [vmem:[%s170_s25 + $0x1] sm:$0x1] %vm197_vm0, %v216_v22 }
  0x3c   : > { %428 = shalt.err (!%p425_p3)
}
  0x3d   : > { %s429_s7 = scalar_lea.hbm %s604_s30, 32  ;;  %s433_s16 = scalar_lea.hbm %s651_s2, 64 }
  0x3e   : > { %p430_p5 = scmp.ne.s32.totalorder %s604_s30, %s429_s7  ;;  %p434_p9 = scmp.lt.u32.totalorder %s604_s30, %s651_s2 }
  0x3f   : > { %p435_p12 = scmp.lt.u32.totalorder %s433_s16, %s429_s7  ;;  %p437_p11 = scmp.lt.u32.totalorder %s429_s7, %s604_s30 }
  0x40   : > { %p431_p6 = pnand %p430_p5, %p556_p4 }
  0x41   : > { %p436_p10 = por %p435_p12, %p434_p9 }
  0x42   : > { %p432_p7 = pneg %p431_p6 }
  0x43   : > { %p438_p13 = por %p437_p11, %p436_p10 }
  0x45   : > { %p439_p0 = pnand %p438_p13, %p432_p7 }
  0x47   : > { %442 = shalt.err (!%p439_p0)
}
  0x48   : > { %338 = dma.vmem_to_hbm [thread:$0]  (%p556_p4), %s599_s26, 32, %s604_s30, %s219_s3  }
  0x49 PF: > { %p350_p1 = scmp.ge.s32.totalorder %s497_s14, 2  ;;  %s245_s23 = sand.u32 1, %s477_s9  }
  0x4a   : > { %s246_s24 = scalar_lea.sflag [#allocation3], %s245_s23 }
  0x4b   : > { %p345_p2 = pnand %p350_p1, %p563_p8 }
  0x4d   : > { %472 = dma.done.wait (!%p345_p2), %s246_s24, 32  }
  0x4e   : > { %474 = vsyncadd (!%p345_p2), %s246_s24, 4294967264  ;;  %s16_s14 = sadd.s32 1, %s497_s14   ;;  %s656_s9 = smov %s481_s10 }
  0x4f   : > { %p13_p3 = scmp.ge.s32.totalorder %s16_s14, 4   ;;  %s657_s10 = smov %s485_s11 }
  0x50   : > { %s658_s11 = smov %s569_s22  ;;  %s659_s12 = smov %s493_s13 }
  0x51   : > { %s660_s13 = smov %s662_s17  ;;  %15 = sbr.rel (!%p13_p3) target bundleno = 5 (0x5), region = 68 }
  0x58   :  { %251 = vsyncpa [#allocation3], 1 }
  0x59   :  { %253 = vsyncpa [#allocation3 + $0x1], 1 }
  0x5a   :  { %254 = vsyncpa [#allocation4], 1 }
  0x5b   :  { %256 = vsyncpa [#allocation4 + $0x1], 1 }

</bundles_post_ra>
